<compile_context>
chip_gen: v5e
topology: v5e:2x2
jax: 0.10.0
libtpu: 0.0.40
codegen_flags: <defaults>
</compile_context>

<pallas_src>
import functools

import jax
import jax.numpy as jnp
from jax import lax
from jax.experimental import pallas as pl
from jax.experimental.pallas import tpu as pltpu

_LANE = 128
_SUBLANE = 8
# Lane-padded VMEM bytes per input block; double-buffered inputs plus the
# in-kernel elementwise temporaries stay well inside the 48 MiB scoped limit,
# which itself fits every generation (v5e/v6e: 128 MiB, v7x: 64 MiB physical).
_TARGET_BLOCK_VMEM_BYTES = 4 * 1024 * 1024
_VMEM_LIMIT_BYTES = 48 * 1024 * 1024


def _round_up(a, b):
    return (a + b - 1) // b * b


def _tv_kernel(x_ref, htv_ref, wtv_ref, *, tr, h):
    # x_ref:   (tr, w)      rows of the folded (B*C*H, W) view (current block)
    # htv_ref: (1, 1, w)    per-core partial vertical-diff sums   (f32, lanes)
    # wtv_ref: (1, 1, w-1)  per-core partial horizontal-diff sums (f32, lanes)
    p = pl.program_id(0)            # parallel (megacore) axis
    j = pl.program_id(1)            # arbitrary accumulation axis
    nblk = pl.num_programs(1)

    # Zero this core's partial-sum block at the start of its accumulation run.
    @pl.when(j == 0)
    def _():
        htv_ref[...] = jnp.zeros_like(htv_ref)
        wtv_ref[...] = jnp.zeros_like(wtv_ref)

    x = x_ref[...].astype(jnp.float32)                     # (tr, w)

    # Vertical differences inside this block of rows.  A pair whose *second*
    # row has global index that is a multiple of h straddles two different
    # (b, c) image slices (or runs into the zero padding) and is masked out.
    dv = x[1:, :] - x[:-1, :]                              # (tr-1, w)
    g0 = (p * nblk + j) * tr                               # global row offset
    gnext = g0 + 1 + lax.broadcasted_iota(jnp.int32, dv.shape, 0)
    in_slice = lax.rem(gnext, jnp.full(dv.shape, h, jnp.int32)) != 0
    dv2 = jnp.where(in_slice, dv * dv, 0.0)

    # Horizontal differences never cross a slice boundary and are zero on the
    # all-zero padding rows — no mask needed.
    dw = x[:, 1:] - x[:, :-1]                              # (tr, w-1)

    # Lane-preserving partial reductions only (leading/sublane axes); the
    # final cross-lane + cross-core reduce happens once, outside the kernel.
    htv_ref[...] += jnp.sum(dv2, axis=0, keepdims=True)[None]
    wtv_ref[...] += jnp.sum(dw * dw, axis=0, keepdims=True)[None]


def l_tv_pallas(x, tvloss_weight=1.0):
    """Total-variation loss matching the PyTorch L_TV module (NCHW input)."""
    b, c, h, w = x.shape
    if h < 2 or w < 2:
        raise ValueError("L_TV needs H >= 2 and W >= 2 (the reference module "
                         "divides by zero otherwise).")

    n = b * c
    r_real = n * h
    x2d = x.reshape(r_real, w)

    # Pick a row-block size from the lane-padded VMEM footprint, but create at
    # least two blocks when possible so the parallel axis can use both
    # TensorCores on v7x (neutral on v5e/v6e).
    itemsize = x.dtype.itemsize
    row_vmem_bytes = _round_up(w, _LANE) * itemsize
    target_rows = max(
        _SUBLANE,
        (_TARGET_BLOCK_VMEM_BYTES // row_vmem_bytes) // _SUBLANE * _SUBLANE)
    half_rows = _round_up(max(1, pl.cdiv(r_real, 2)), _SUBLANE)
    tr = max(_SUBLANE, min(target_rows, half_rows))

    n_total = pl.cdiv(r_real, tr)
    n_par = 2 if n_total >= 2 else 1
    n_blocks = pl.cdiv(n_total, n_par)
    r_pad = n_par * n_blocks * tr

    x2d_pad = x2d
    if r_pad != r_real:
        x2d_pad = jnp.pad(x2d, ((0, r_pad - r_real), (0, 0)))

    kernel = functools.partial(_tv_kernel, tr=tr, h=h)

    flops = 6 * n * h * w
    bytes_accessed = r_pad * w * itemsize + 4 * n_par * (2 * w - 1)

    h_part, w_part = pl.pallas_call(
        kernel,
        out_shape=(
            jax.ShapeDtypeStruct((n_par, 1, w), jnp.float32),
            jax.ShapeDtypeStruct((n_par, 1, w - 1), jnp.float32),
        ),
        grid_spec=pltpu.PrefetchScalarGridSpec(
            num_scalar_prefetch=0,
            grid=(n_par, n_blocks),
            in_specs=[pl.BlockSpec((tr, w), lambda p, j: (p * n_blocks + j, 0))],
            out_specs=(
                pl.BlockSpec((1, 1, w), lambda p, j: (p, 0, 0)),
                pl.BlockSpec((1, 1, w - 1), lambda p, j: (p, 0, 0)),
            ),
        ),
        compiler_params=pltpu.CompilerParams(
            dimension_semantics=("parallel", "arbitrary"),
            vmem_limit_bytes=_VMEM_LIMIT_BYTES),
        cost_estimate=pl.CostEstimate(
            flops=flops, transcendentals=0, bytes_accessed=bytes_accessed),
    )(x2d_pad)

    h_tv = jnp.sum(h_part)
    w_tv = jnp.sum(w_part)

    # Vertical pairs that straddle a block boundary are not visible inside any
    # single block (no halo DMA); there are only ~(rows / tr) of them, so
    # finish them here in plain JAX on the original rows.
    seam_rows = [s for s in range(tr, r_real, tr) if s % h != 0]
    if seam_rows:
        idx = jnp.asarray(seam_rows, dtype=jnp.int32)
        top = x2d[idx - 1, :].astype(jnp.float32)
        bot = x2d[idx, :].astype(jnp.float32)
        h_tv = h_tv + jnp.sum((bot - top) ** 2)

    count_h = (h - 1) * w
    count_w = h * (w - 1)
    loss = tvloss_weight * 2.0 * (h_tv / count_h + w_tv / count_w) / b
    return loss  # scalar; .mean() on a scalar is identity


def _l_tv_ref(x, tvloss_weight=1.0):
    b, _, h, w = x.shape
    dh = x[:, :, 1:, :] - x[:, :, :-1, :]
    dw = x[:, :, :, 1:] - x[:, :, :, :-1]
    return tvloss_weight * 2.0 * (jnp.sum(dh ** 2) / ((h - 1) * w)
                                  + jnp.sum(dw ** 2) / (h * (w - 1))) / b


if __name__ == "__main__":
    # Primary shape implied by the module: small NCHW image batch.
    x = jax.random.normal(jax.random.PRNGKey(0), (2, 4, 16, 16),
                          dtype=jnp.float32)
    out = l_tv_pallas(x)
    jax.block_until_ready(out)
    ref = _l_tv_ref(x)
    assert jnp.allclose(out, ref, rtol=1e-4, atol=1e-6), (out, ref)

    # Second shape exercises zero padding, the intra-block slice-boundary
    # mask, and the cross-block seam fix-up path.
    x2 = jax.random.normal(jax.random.PRNGKey(1), (2, 3, 10, 24),
                           dtype=jnp.float32)
    out2 = l_tv_pallas(x2)
    jax.block_until_ready(out2)
    ref2 = _l_tv_ref(x2)
    assert jnp.allclose(out2, ref2, rtol=1e-4, atol=1e-6), (out2, ref2)

    print("KERNEL_OK")
</pallas_src>

<mosaic_0001>
module attributes {stable_mosaic.version = 11 : i64} {
  func.func @_tv_kernel(%arg0: i32, %arg1: i32, %arg2: memref<64x16xf32, #tpu.memory_space<vmem>>, %arg3: memref<1x1x16xf32, #tpu.memory_space<vmem>>, %arg4: memref<1x1x15xf32, #tpu.memory_space<vmem>>) attributes {dimension_semantics = [#tpu.dimension_semantics<parallel>, #tpu.dimension_semantics<arbitrary>], iteration_bounds = array<i64: 2, 1>, scalar_prefetch = 0 : i64, scratch_operands = 0 : i64, tpu.core_type = #tpu.core_type<tc>, window_params = [{transform_indices = @transform_0, window_bounds = array<i64: 64, 16>}, {transform_indices = @transform_1, window_bounds = array<i64: 1, 1, 16>}, {transform_indices = @transform_2, window_bounds = array<i64: 1, 1, 15>}]} {
    %c0_i32 = arith.constant 0 : i32
    %0 = arith.cmpi eq, %arg1, %c0_i32 : i32
    %1 = arith.extui %0 : i1 to i32
    %c0_i32_0 = arith.constant 0 : i32
    %2 = arith.cmpi ne, %1, %c0_i32_0 : i32
    scf.if %2 {
      %cst_18 = arith.constant 0.000000e+00 : f32
      %37 = vector.broadcast %cst_18 : f32 to vector<1x1x16xf32>
      %c0_19 = arith.constant 0 : index
      %c0_20 = arith.constant 0 : index
      %c0_21 = arith.constant 0 : index
      %38 = vector.load %arg3[%c0_19, %c0_20, %c0_21] : memref<1x1x16xf32, #tpu.memory_space<vmem>>, vector<1x1x16xf32>
      tpu.vector_store %arg3[%c0_19, %c0_20, %c0_21], %37 {strides = array<i32>} : memref<1x1x16xf32, #tpu.memory_space<vmem>>, vector<1x1x16xf32>,
      %cst_22 = arith.constant 0.000000e+00 : f32
      %39 = vector.broadcast %cst_22 : f32 to vector<1x1x15xf32>
      %c0_23 = arith.constant 0 : index
      %c0_24 = arith.constant 0 : index
      %c0_25 = arith.constant 0 : index
      %40 = vector.load %arg4[%c0_23, %c0_24, %c0_25] : memref<1x1x15xf32, #tpu.memory_space<vmem>>, vector<1x1x15xf32>
      tpu.vector_store %arg4[%c0_23, %c0_24, %c0_25], %39 {strides = array<i32>} : memref<1x1x15xf32, #tpu.memory_space<vmem>>, vector<1x1x15xf32>,
    } else {
    }
    %c0 = arith.constant 0 : index
    %c0_1 = arith.constant 0 : index
    %3 = vector.load %arg2[%c0, %c0_1] : memref<64x16xf32, #tpu.memory_space<vmem>>, vector<64x16xf32>
    %4 = vector.extract_strided_slice %3 {offsets = [1, 0], sizes = [63, 16], strides = [1, 1]} : vector<64x16xf32> to vector<63x16xf32>
    %5 = vector.extract_strided_slice %3 {offsets = [0, 0], sizes = [63, 16], strides = [1, 1]} : vector<64x16xf32> to vector<63x16xf32>
    %6 = arith.subf %4, %5 : vector<63x16xf32>
    %c1_i32 = arith.constant 1 : i32
    %7 = arith.muli %arg0, %c1_i32 : i32
    %8 = arith.addi %7, %arg1 : i32
    %c64_i32 = arith.constant 64 : i32
    %9 = arith.muli %8, %c64_i32 : i32
    %c1_i32_2 = arith.constant 1 : i32
    %10 = arith.addi %9, %c1_i32_2 : i32
    %11 = tpu.iota {dimensions = array<i32: 0>} : vector<63x16xi32>
    %12 = vector.broadcast %10 : i32 to vector<63x16xi32>
    %13 = arith.addi %12, %11 : vector<63x16xi32>
    %c16_i32 = arith.constant 16 : i32
    %14 = vector.broadcast %c16_i32 : i32 to vector<63x16xi32>
    %15 = arith.remsi %13, %14 : vector<63x16xi32>
    %c0_i32_3 = arith.constant 0 : i32
    %16 = vector.broadcast %c0_i32_3 : i32 to vector<63x16xi32>
    %17 = arith.cmpi ne, %15, %16 : vector<63x16xi32>
    %18 = arith.mulf %6, %6 : vector<63x16xf32>
    %cst = arith.constant 0.000000e+00 : f32
    %19 = vector.broadcast %cst : f32 to vector<63x16xf32>
    %20 = arith.select %17, %18, %19 : vector<63x16xi1>, vector<63x16xf32>
    %21 = vector.extract_strided_slice %3 {offsets = [0, 1], sizes = [64, 15], strides = [1, 1]} : vector<64x16xf32> to vector<64x15xf32>
    %22 = vector.extract_strided_slice %3 {offsets = [0, 0], sizes = [64, 15], strides = [1, 1]} : vector<64x16xf32> to vector<64x15xf32>
    %23 = arith.subf %21, %22 : vector<64x15xf32>
    %c0_4 = arith.constant 0 : index
    %c0_5 = arith.constant 0 : index
    %c0_6 = arith.constant 0 : index
    %24 = vector.load %arg3[%c0_4, %c0_5, %c0_6] : memref<1x1x16xf32, #tpu.memory_space<vmem>>, vector<1x1x16xf32>
    %cst_7 = arith.constant dense<0.000000e+00> : vector<16xf32>
    %25 = vector.multi_reduction <add>, %20, %cst_7 [0] : vector<63x16xf32> to vector<16xf32>
    %26 = vector.shape_cast %25 : vector<16xf32> to vector<1x16xf32>
    %27 = vector.shape_cast %26 : vector<1x16xf32> to vector<1x1x16xf32>
    %28 = arith.addf %24, %27 : vector<1x1x16xf32>
    %c0_8 = arith.constant 0 : index
    %c0_9 = arith.constant 0 : index
    %c0_10 = arith.constant 0 : index
    %29 = vector.load %arg3[%c0_8, %c0_9, %c0_10] : memref<1x1x16xf32, #tpu.memory_space<vmem>>, vector<1x1x16xf32>
    tpu.vector_store %arg3[%c0_8, %c0_9, %c0_10], %28 {strides = array<i32>} : memref<1x1x16xf32, #tpu.memory_space<vmem>>, vector<1x1x16xf32>,
    %c0_11 = arith.constant 0 : index
    %c0_12 = arith.constant 0 : index
    %c0_13 = arith.constant 0 : index
    %30 = vector.load %arg4[%c0_11, %c0_12, %c0_13] : memref<1x1x15xf32, #tpu.memory_space<vmem>>, vector<1x1x15xf32>
    %31 = arith.mulf %23, %23 : vector<64x15xf32>
    %cst_14 = arith.constant dense<0.000000e+00> : vector<15xf32>
    %32 = vector.multi_reduction <add>, %31, %cst_14 [0] : vector<64x15xf32> to vector<15xf32>
    %33 = vector.shape_cast %32 : vector<15xf32> to vector<1x15xf32>
    %34 = vector.shape_cast %33 : vector<1x15xf32> to vector<1x1x15xf32>
    %35 = arith.addf %30, %34 : vector<1x1x15xf32>
    %c0_15 = arith.constant 0 : index
    %c0_16 = arith.constant 0 : index
    %c0_17 = arith.constant 0 : index
    %36 = vector.load %arg4[%c0_15, %c0_16, %c0_17] : memref<1x1x15xf32, #tpu.memory_space<vmem>>, vector<1x1x15xf32>
    tpu.vector_store %arg4[%c0_15, %c0_16, %c0_17], %35 {strides = array<i32>} : memref<1x1x15xf32, #tpu.memory_space<vmem>>, vector<1x1x15xf32>,
    return
  }
  func.func @transform_0(%arg0: i32, %arg1: i32) -> (i32, i32) {
    %c1_i32 = arith.constant 1 : i32
    %0 = arith.muli %arg0, %c1_i32 : i32
    %1 = arith.addi %0, %arg1 : i32
    %c0_i32 = arith.constant 0 : i32
    %c0_i32_0 = arith.constant 0 : i32
    return %1, %c0_i32 : i32, i32
  }
  func.func @transform_1(%arg0: i32, %arg1: i32) -> (i32, i32, i32) {
    %c0_i32 = arith.constant 0 : i32
    %c0_i32_0 = arith.constant 0 : i32
    %c0_i32_1 = arith.constant 0 : i32
    return %arg0, %c0_i32, %c0_i32_0 : i32, i32, i32
  }
  func.func @transform_2(%arg0: i32, %arg1: i32) -> (i32, i32, i32) {
    %c0_i32 = arith.constant 0 : i32
    %c0_i32_0 = arith.constant 0 : i32
    %c0_i32_1 = arith.constant 0 : i32
    return %arg0, %c0_i32, %c0_i32_0 : i32, i32, i32
  }
}

</mosaic_0001>

<bundles_post_ra>
// kernel: tpu_custom_call.1
= control target key start
LH: loop header
LB: loop body
LE: loop exit
PB: predicated region body
PF: predicated region fallthrough
CT: control target
= control target key end

     0   :  { %8 = vsyncpa [#allocation3], 0  ;;  %s1049_s0 = inlined_call_operand.vmem [shape: f32[128,16], index: 0, kind: input, shape index: {}]   ;;  %s1050_s1 = inlined_call_operand.hbm [shape: f32[2,1,16], index: 1, kind: output, shape index: {0}]   ;;  %s1051_s2 = inlined_call_operand.hbm [shape: f32[2,1,15], index: 2, kind: output, shape index: {1}]  }
   0x1   :  { %10 = vsyncpa [#allocation3 + $0x1], 0 }
   0x2   :  { %11 = vsyncpa [#allocation5], 0 }
   0x3   :  { %13 = vsyncpa [#allocation5 + $0x1], 0  ;;  %s782_s9 = smov 0   ;;  %s784_s10 = smov 0  }
   0x4   :  { %s786_s11 = smov 0   ;;  %s788_s12 = smov 0  }
   0x5   :  { %s790_s13 = smov 0   ;;  %s792_s14 = smov 0  }
   0x6 LB: > { %s579_s15 = sadd.s32 4294967295, %s762_s14   ;;  %s580_s16 = sadd.s32 4294967294, %s762_s14   ;;  %s762_s14 = sphi %s792_s14, %s19_s14   ;;  %s758_s13 = sphi %s790_s13, %s1058_s13   ;;  %s754_s12 = sphi %s788_s12, %s1057_s12   ;;  %s750_s11 = sphi %s786_s11, %s1056_s11   ;;  %s746_s10 = sphi %s784_s10, %s1055_s10   ;;  %s742_s9 = sphi %s782_s9, %s1054_s9  }
   0x7   : > { %s31_s17 = sadd.s32 1, %s758_s13  ;;  %s66_s18 = sadd.s32 1, %s750_s11 }
   0x8   : > { %p33_p0 = scmp.ge.s32.totalorder %s31_s17, 2  ;;  %p76_p1 = scmp.ne.s32.totalorder %s750_s11, %s746_s10 }
   0x9   : > { %p77_p2 = scmp.eq.s32.totalorder %s579_s15, 1  ;;  %p82_p3 = scmp.ne.s32.totalorder %s746_s10, %s742_s9 }
   0xa   : > { %s1060_s17 = smov (%p33_p0, %s31_s17), 0  ;;  %p83_p5 = scmp.eq.s32.totalorder %s580_s16, 1 }
   0xb   : > { %p822_p4 = por %p77_p2, %p76_p1  ;;  %s63_s20 = ssub.s32 %s758_s13, %s1060_s17 }
   0xc   : > { %p583_p6 = scmp.ge.s32.totalorder %s762_s14, 1  ;;  %p64_p7 = scmp.eq.s32.totalorder %s63_s20, 0 }
   0xd   : > { %p829_p8 = por %p83_p5, %p82_p3  ;;  %p138_p9 = scmp.lt.s32.totalorder %s762_s14, 3 }
   0xe   : > { %s835_s22 = scalar_select %p64_p7, %s750_s11, %s66_s18  }
   0xf   : > { %p139_p10 = pnand %p583_p6, %p138_p9 }
  0x10   : > { %s584_s23 = sshll.u32 (!%p139_p10), %s754_s12, 3  ;;  %s764_s28 = smov (!%p139_p10), 1  }
  0x11   : > { %142 = sbr.rel (%p139_p10) target bundleno = 276 (0x114), region = 24  ;;  %p166_p11 = scmp.lt.s32.totalorder (!%p139_p10), %s584_s23, 15 }
  0x12   : > { %s866_s29 = sand.u32 (!%p139_p10), 1, %s746_s10   ;;  %s586_s3 = sshll.u32 (!%p139_p10), %s754_s12, 6 }
  0x13   : > { %s873_s30 = scalar_lea.vmem (!%p139_p10), [#allocation4], %s866_s29  ;;  %s230_s4 = sadd.s32 (!%p139_p10), 1, %s586_s3 }
  0x14   : > { %s766_s5 = smov (!%p139_p10), 127   ;;  %s157_s6 = scalar_lea.vmem (!%p139_p10), [#allocation2], %s866_s29 }
  0x15   : > { %s471_s15 = scalar_lea.hbm (!%p139_p10), %s1050_s1, %s754_s12  ;;  %s473_s16 = sshll.u32 (!%p139_p10), %s157_s6, 4  ;;  %s474_s16 = int_to_ptr.vmem [resolvable:$true] %s473_s16 }
  0x16   : > { %s1062_s23 = smov (!%p166_p11, %s584_s23), 15  ;;  %vm178_vm0 = vcmask 114688   ;;  %v765_v19 = vmov 0.0   ;;  %vm429_vm1 = vcmask 130056   ;;  %v231_v35 = vlaneseq  ;;  %s475_s18 = sshll.u32 %s471_s15, 4  ;;  %s476_s18 = int_to_ptr.hbm [resolvable:$true] %s475_s18 }
  0x17   : > { %s585_s24 = sshll.u32 %s1062_s23, 3  ;;  %179 = vst.msk [vmem:[%s873_s30] sm:$0x1] %vm178_vm0, %v765_v19  ;;  %v891_v48 = vstv %s230_s4  ;;  %vm196_vm3 = vcmask 1040384   ;;  %vm329_vm7 = vcmask 1046528   ;;  %vm394_vm12 = vcmask 130048  }
  0x18   : > { %s169_s27 = scalar_lea.vmem %s1049_s0, %s585_s24  ;;  %v232_v44 = vshrl.u32 %v231_v35, 7  ;;  %s459_s20 = scalar_lea.sflag [#allocation3], %s866_s29 }
  0x19   : > { %v841_v0 = vld [vmem:[%s169_s27] sm:$0xff]  ;;  %v843_v1 = vld [vmem:[%s169_s27 + $0x10] sm:$0xff]  ;;  %v850_v3 = vld [vmem:[%s169_s27 + $0x8] sm:$0xff]  ;;  %s666_s23 = sshra.s32 %s476_s18, 4  ;;  %s667_s23 = int_to_ptr.hbm [resolvable:$true] %s666_s23 }
  0x1a   : > { %361 = vrot.lane.b32.xlu0 %v841_v0, %s764_s28  ;;  %365 = vrot.lane.b32.xlu1 %v843_v1, %s764_s28  ;;  %v847_v2 = vld [vmem:[%s169_s27 + $0x20] sm:$0xff]  ;;  %v852_v4 = vld [vmem:[%s169_s27 + $0x18] sm:$0xff]  ;;  %v233_v50 = vadd.s32 8, %v232_v44  ;;  %v241_v52 = vadd.s32 %v891_v48, %v232_v44  ;;  %v234_v55 = vadd.s32 16, %v232_v44  ;;  %v197_v58 = vrot.slane %v841_v0, 7  ;;  %s668_s24 = scalar_lea.hbm %s667_s23, 1  ;;  %p673_p1 = scmp.lt.s32.totalorder %s667_s23, %s1050_s1 }
  0x1b   : > { %369 = vrot.lane.b32.xlu2 %v847_v2, %s764_s28  ;;  %v854_v5 = vld [vmem:[%s169_s27 + $0x28] sm:$0xff]  ;;  %v859_v6 = vld [vmem:[%s169_s27 + $0x30] sm:$0xff]  ;;  %v861_v7 = vld [vmem:[%s169_s27 + $0x38] sm:$0xff]  ;;  %v200_v59 = vrot.slane %v843_v1, 7  ;;  %v198_v60 = vrot.slane %v850_v3, 7  ;;  %p669_p12 = scmp.ne.s32.totalorder %s667_s23, %s668_s24  ;;  %s672_s27 = scalar_lea.hbm %s1050_s1, 2 }
  0x1c   : > { %v242_v54 = vadd.s32 %v891_v48, %v233_v50  ;;  %vm249_vm2 = vcmp.lt.s32.totalorder %v241_v52, 0  ;;  %v250_v57 = vsub.s32 0, %v241_v52  ;;  %v899_v63 = vadd.s32 %v891_v48, %v234_v55  ;;  %p674_p2 = scmp.lt.s32.totalorder %s672_s27, %s668_s24 }
  0x1d   : > { %v210_v55 = vrot.slane %v861_v7, 7  ;;  %p670_p13 = pnand %p669_p12, %p822_p4 }
  0x1e   : > { %v257_v62 = vsub.s32 0, %v242_v54  ;;  %vm256_vm4 = vcmp.lt.s32.totalorder %v242_v54, 0  ;;  %vm263_vm5 = vcmp.lt.s32.totalorder %v899_v63, 0  ;;  %p675_p3 = por %p674_p2, %p673_p1 }
  0x1f   : > { %p671_p0 = pneg %p670_p13 }
  0x21   : > { %p676_p5 = pnand %p675_p3, %p671_p0 }
  0x22   : > { %363 = vrot.lane.b32.xlu0 %v850_v3, %s764_s28  ;;  %367 = vrot.lane.b32.xlu1 %v852_v4, %s764_s28 }
  0x23   : > { %371 = vrot.lane.b32.xlu2 %v854_v5, %s764_s28 }
  0x2a   : > { %373 = vrot.lane.b32.xlu0 %v859_v6, %s764_s28  ;;  %375 = vrot.lane.b32.xlu1 %v861_v7, %s764_s28 }
  0x75   : > { %v370_v8 = vpop.permute.xlu2 %369 }
  0x76   : > { %v389_v20 = vsub.f32 %v847_v2, %v370_v8  ;;  %v235_v8 = vadd.s32 24, %v232_v44 }
  0x78   : > { %v425_v29 = vmul.f32 %v389_v20, %v389_v20  ;;  %v909_v20 = vadd.s32 %v891_v48, %v235_v8 }
  0x7a   : > { %v437_v39 = vsel %vm429_vm1, %v425_v29, 0.0  ;;  %vm270_vm6 = vcmp.lt.s32.totalorder %v909_v20, 0 }
  0x7d   : > { %v372_v13 = vpop.permute.xlu2 %371 }
  0x7e   : > { %v390_v24 = vsub.f32 %v854_v5, %v372_v13 }
  0x80   : > { %v426_v31 = vmul.f32 %v390_v24, %v390_v24 }
  0x82   : > { %v439_v40 = vsel %vm429_vm1, %v426_v31, 0.0  ;;  %v237_v31 = vadd.s32 40, %v232_v44 }
  0x8c   : > { %v362_v9 = vpop.permute.xlu0 %361  ;;  %v366_v10 = vpop.permute.xlu1 %365 }
  0x8d   : > { %v385_v11 = vsub.f32 %v841_v0, %v362_v9  ;;  %v387_v12 = vsub.f32 %v843_v1, %v366_v10  ;;  %v251_v10 = vsel %vm249_vm2, %v250_v57, %v241_v52 }
  0x8f   : > { %v421_v16 = vmul.f32 %v385_v11, %v385_v11  ;;  %v423_v21 = vmul.f32 %v387_v12, %v387_v12  ;;  %v201_v11 = vsel %vm196_vm3, %v198_v60, %v200_v59  ;;  %v199_v12 = vsel %vm196_vm3, %v197_v58, %v198_v60 }
  0x90   : > { %v221_v24 = vsub.f32 %v850_v3, %v199_v12 }
  0x91   : > { %v430_v25 = vsel %vm429_vm1, %v421_v16, 0.0  ;;  %v433_v28 = vsel %vm429_vm1, %v423_v21, 0.0  ;;  %v264_v16 = vsub.s32 0, %v899_v63 }
  0x94   : > { %v364_v14 = vpop.permute.xlu0 %363  ;;  %v368_v15 = vpop.permute.xlu1 %367 }
  0x95   : > { %v386_v17 = vsub.f32 %v850_v3, %v364_v14  ;;  %v388_v18 = vsub.f32 %v852_v4, %v368_v15  ;;  %v258_v14 = vsel %vm256_vm4, %v257_v62, %v242_v54  ;;  %v202_v15 = vrot.slane %v852_v4, 7 }
  0x97   : > { %v422_v22 = vmul.f32 %v386_v17, %v386_v17  ;;  %v424_v23 = vmul.f32 %v388_v18, %v388_v18  ;;  %v236_v17 = vadd.s32 32, %v232_v44  ;;  %v253_v18 = vand.u32 15, %v251_v10 }
  0x99   : > { %v431_v26 = vsel %vm429_vm1, %v422_v22, 0.0  ;;  %v435_v30 = vsel %vm429_vm1, %v424_v23, 0.0  ;;  %v220_v22 = vsub.f32 %v841_v0, %v197_v58  ;;  %v222_v23 = vsub.f32 %v843_v1, %v201_v11 }
  0x9a   : > { %v432_v27 = vadd.f32 %v431_v26, %v430_v25  ;;  %v260_v25 = vand.u32 15, %v258_v14  ;;  %v265_v26 = vsel %vm263_vm5, %v264_v16, %v899_v63  ;;  %v254_v29 = vsub.s32 0, %v253_v18 }
  0x9b   : > { %v921_v0 = vadd.s32 %v891_v48, %v236_v17  ;;  %v313_v1 = vmul.f32 %v220_v22, %v220_v22  ;;  %v315_v3 = vmul.f32 %v222_v23, %v222_v23 }
  0x9c   : > { %v434_v32 = vadd.f32 %v433_v28, %v432_v27  ;;  %v374_v33 = vpop.permute.xlu0 %373  ;;  %v376_v34 = vpop.permute.xlu1 %375  ;;  %v203_v27 = vsel %vm196_vm3, %v200_v59, %v202_v15  ;;  %v204_v28 = vrot.slane %v847_v2, 7 }
  0x9d   : > { %v391_v36 = vsub.f32 %v859_v6, %v374_v33  ;;  %v392_v37 = vsub.f32 %v861_v7, %v376_v34  ;;  %v261_v33 = vsub.s32 0, %v260_v25  ;;  %v267_v34 = vand.u32 15, %v265_v26 }
  0x9e   : > { %v436_v38 = vadd.f32 %v435_v30, %v434_v32  ;;  %v271_v30 = vsub.s32 0, %v909_v20  ;;  %v314_v32 = vmul.f32 %v221_v24, %v221_v24  ;;  %v223_v35 = vsub.f32 %v852_v4, %v203_v27 }
  0x9f   : > { %v427_v41 = vmul.f32 %v391_v36, %v391_v36  ;;  %v428_v42 = vmul.f32 %v392_v37, %v392_v37  ;;  %v239_v36 = vadd.s32 56, %v232_v44  ;;  %v205_v37 = vsel %vm196_vm3, %v202_v15, %v204_v28 }
  0xa0   : > { %v438_v43 = vadd.f32 %v437_v39, %v436_v38  ;;  %v206_v38 = vrot.slane %v854_v5, 7  ;;  %v238_v39 = vadd.s32 48, %v232_v44  ;;  %v331_v4 = vrot.slane %v314_v32, 1 }
  0xa1   : > { %v441_v45 = vsel %vm429_vm1, %v427_v41, 0.0  ;;  %v443_v47 = vsel %vm429_vm1, %v428_v42, 0.0  ;;  %v272_v41 = vsel %vm270_vm6, %v271_v30, %v909_v20  ;;  %v932_v42 = vadd.s32 %v891_v48, %v237_v31 }
  0xa2   : > { %v440_v46 = vadd.f32 %v439_v40, %v438_v43  ;;  %v255_v40 = vsel %vm249_vm2, %v254_v29, %v253_v18  ;;  %v278_v43 = vsub.s32 0, %v921_v0  ;;  %vm277_vm8 = vcmp.lt.s32.totalorder %v921_v0, 0 }
  0xa3   : > { %v316_v44 = vmul.f32 %v223_v35, %v223_v35  ;;  %v224_v50 = vsub.f32 %v847_v2, %v205_v37  ;;  %vm305_vm9 = vcmp.ne.s32.totalorder %v255_v40, 0  ;;  %v274_v52 = vand.u32 15, %v272_v41 }
  0xa4   : > { %v442_v49 = vadd.f32 %v441_v45, %v440_v46  ;;  %v330_v45 = vrot.slane %v313_v1, 1  ;;  %v333_v46 = vrot.slane %v315_v3, 1  ;;  %v279_v54 = vsel %vm277_vm8, %v278_v43, %v921_v0 }
  0xa5   : > { %v285_v57 = vsub.s32 0, %v932_v42  ;;  %vm284_vm11 = vcmp.lt.s32.totalorder %v932_v42, 0  ;;  %v335_v60 = vrot.slane %v316_v44, 1  ;;  %v275_v8 = vsub.s32 0, %v274_v52 }
  0xa6   : > { %v444_v51 = vadd.f32 %v443_v47, %v442_v49  ;;  %v262_v47 = vsel %vm256_vm4, %v261_v33, %v260_v25  ;;  %v268_v49 = vsub.s32 0, %v267_v34  ;;  %v332_v2 = vsel %vm329_vm7, %v330_v45, %v331_v4 }
  0xa7   : > { %vm306_vm10 = vcmp.ne.s32.totalorder %v262_v47, 0  ;;  %v334_v58 = vsel %vm329_vm7, %v331_v4, %v333_v46  ;;  %v281_v10 = vand.u32 15, %v279_v54  ;;  %v353_v11 = vsel %vm305_vm9, %v332_v2, 0.0 }
  0xa8   : > { %v445_v53 = vrot.slane %v444_v51, 4  ;;  %v269_v59 = vsel %vm263_vm5, %v268_v49, %v267_v34  ;;  %v248_v12 = vadd.s32 %v891_v48, %v239_v36  ;;  %v354_v14 = vsel %vm306_vm10, %v334_v58, 0.0 }
  0xa9   : > { %vm307_vm13 = vcmp.ne.s32.totalorder %v269_v59, 0  ;;  %v336_v15 = vsel %vm329_vm7, %v333_v46, %v335_v60  ;;  %v395_v23 = vsel %vm394_vm12, %v353_v11, 0.0  ;;  %v396_v24 = vsel %vm394_vm12, %v354_v14, 0.0 }
  0xaa   : > { %v446_v56 = vadd.f32 %v445_v53, %v444_v51  ;;  %v208_v51 = vrot.slane %v859_v6, 7  ;;  %v207_v53 = vsel %vm196_vm3, %v204_v28, %v206_v38  ;;  %v299_v25 = vsub.s32 0, %v248_v12 }
  0xab   : > { %v225_v62 = vsub.f32 %v854_v5, %v207_v53  ;;  %v355_v27 = vsel %vm307_vm13, %v336_v15, 0.0  ;;  %vm298_vm15 = vcmp.lt.s32.totalorder %v248_v12, 0  ;;  %v397_v30 = vadd.f32 %v396_v24, %v395_v23 }
  0xac   : > { %v447_v61 = vrot.slane %v446_v56, 2  ;;  %v211_v5 = vsel %vm196_vm3, %v208_v51, %v210_v55  ;;  %v398_v32 = vsel %vm394_vm12, %v355_v27, 0.0  ;;  %v300_v33 = vsel %vm298_vm15, %v299_v25, %v248_v12 }
  0xad   : > { %v318_v18 = vmul.f32 %v225_v62, %v225_v62  ;;  %v227_v28 = vsub.f32 %v861_v7, %v211_v5  ;;  %v399_v37 = vadd.f32 %v398_v32, %v397_v30 }
  0xae   : > { %v448_v9 = vadd.f32 %v447_v61, %v446_v56  ;;  %v942_v56 = vadd.s32 %v891_v48, %v238_v39  ;;  %v317_v61 = vmul.f32 %v224_v50, %v224_v50  ;;  %v276_v48 = vsel %vm270_vm6, %v275_v8, %v274_v52 }
  0xaf   : > { %vm308_vm1 = vcmp.ne.s32.totalorder %v276_v48, 0  ;;  %v339_v29 = vrot.slane %v318_v18, 1  ;;  %v320_v35 = vmul.f32 %v227_v28, %v227_v28  ;;  %vm408_vm6 = vcmask 129024  }
  0xb0   : > { %v449_v13 = vrot.slane %v448_v9, 1  ;;  %v292_v63 = vsub.s32 0, %v942_v56  ;;  %vm291_vm14 = vcmp.lt.s32.totalorder %v942_v56, 0  ;;  %v337_v16 = vrot.slane %v317_v61, 1 }
  0xb1   : > { %v343_v43 = vrot.slane %v320_v35, 1 }
  0xb2   : > { %v450_v21 = vadd.f32 %v449_v13, %v448_v9  ;;  %v209_v9 = vsel %vm196_vm3, %v206_v38, %v208_v51  ;;  %v286_v13 = vsel %vm284_vm11, %v285_v57, %v932_v42  ;;  %v293_v26 = vsel %vm291_vm14, %v292_v63, %v942_v56 }
  0xb3   : > { %v226_v17 = vsub.f32 %v859_v6, %v209_v9  ;;  %v288_v22 = vand.u32 15, %v286_v13  ;;  %v338_v6 = vsel %vm329_vm7, %v335_v60, %v337_v16  ;;  %v295_v3 = vand.u32 15, %v293_v26 }
  0xb4   : > { %452 = vrot.lane.b32.xlu2 %v450_v21, %s766_s5  ;;  %v282_v21 = vsub.s32 0, %v281_v10  ;;  %v356_v34 = vsel %vm308_vm1, %v338_v6, 0.0  ;;  %v340_v36 = vsel %vm329_vm7, %v337_v16, %v339_v29  ;;  %v302_v38 = vand.u32 15, %v300_v33 }
  0xb5   : > { %v319_v20 = vmul.f32 %v226_v17, %v226_v17  ;;  %v289_v1 = vsub.s32 0, %v288_v22  ;;  %v296_v40 = vsub.s32 0, %v295_v3  ;;  %v400_v0 = vsel %vm394_vm12, %v356_v34, 0.0 }
  0xb6   : > { %v283_v31 = vsel %vm277_vm8, %v282_v21, %v281_v10  ;;  %v303_v46 = vsub.s32 0, %v302_v38  ;;  %v401_v4 = vadd.f32 %v400_v0, %v399_v37 }
  0xb7   : > { %vm309_vm2 = vcmp.ne.s32.totalorder %v283_v31, 0  ;;  %v341_v7 = vrot.slane %v319_v20, 1  ;;  %v290_v39 = vsel %vm284_vm11, %v289_v1, %v288_v22  ;;  %v297_v47 = vsel %vm291_vm14, %v296_v40, %v295_v3 }
  0xb8   : > { %v357_v41 = vsel %vm309_vm2, %v340_v36, 0.0  ;;  %vm310_vm3 = vcmp.ne.s32.totalorder %v290_v39, 0  ;;  %vm311_vm4 = vcmp.ne.s32.totalorder %v297_v47, 0  ;;  %v304_v50 = vsel %vm298_vm15, %v303_v46, %v302_v38 }
  0xb9   : > { %v342_v45 = vsel %vm329_vm7, %v339_v29, %v341_v7  ;;  %v402_v49 = vsel %vm394_vm12, %v357_v41, 0.0  ;;  %v344_v42 = vsel %vm329_vm7, %v341_v7, %v343_v43  ;;  %vm312_vm5 = vcmp.ne.s32.totalorder %v304_v50, 0 }
  0xba   : > { %v358_v44 = vsel %vm310_vm3, %v342_v45, 0.0  ;;  %v403_v51 = vadd.f32 %v402_v49, %v401_v4  ;;  %v359_v53 = vsel %vm311_vm4, %v344_v42, 0.0  ;;  %v360_v56 = vsel %vm312_vm5, %v343_v43, 0.0 }
  0xbb   : > { %v404_v52 = vsel %vm394_vm12, %v358_v44, 0.0  ;;  %v406_v54 = vsel %vm394_vm12, %v359_v53, 0.0  ;;  %v409_v2 = vsel %vm408_vm6, %v360_v56, 0.0  ;;  %vm176_vm7 = vcmask 122880  }
  0xbc   : > { %v405_v55 = vadd.f32 %v404_v52, %v403_v51  ;;  %177 = vst.msk [vmem:[%s157_s6] sm:$0x1] %vm176_vm7, %v765_v19 }
  0xbe   : > { %v407_v57 = vadd.f32 %v406_v54, %v405_v55 }
  0xc0   : > { %v410_v58 = vadd.f32 %v409_v2, %v407_v57 }
  0xc2   : > { %v411_v59 = vrot.slane %v410_v58, 4 }
  0xc3   : > { %v393_v10 = vld [vmem:[%s157_s6] sm:$0x1] }
  0xc4   : > { %v412_v60 = vadd.f32 %v411_v59, %v410_v58 }
  0xc6   : > { %v413_v61 = vrot.slane %v412_v60, 2 }
  0xc8   : > { %v414_v62 = vadd.f32 %v413_v61, %v412_v60 }
  0xca   : > { %v415_v8 = vrot.slane %v414_v62, 1 }
  0xcc   : > { %v416_v9 = vadd.f32 %v415_v8, %v414_v62 }
  0xce   : > { %v417_v11 = vadd.f32 %v416_v9, %v393_v10 }
  0xd0   : > { %419 = vst.msk [vmem:[%s157_s6] sm:$0x1] %vm176_vm7, %v417_v11 }
  0xd1   : > { %679 = shalt.err (!%p676_p5)
}
  0xd2   : > { %589 = dma.vmem_to_hbm [thread:$0]  (%p822_p4), %s474_s16, 16, %s476_s18, %s459_s20   ;;  %v420_v19 = vld [vmem:[%s873_s30] sm:$0x1] }
  0xd3   : > { %s484_s6 = scalar_lea.hbm %s1051_s2, %s754_s12  ;;  %s486_s7 = sshll.u32 %s873_s30, 4  ;;  %s487_s7 = int_to_ptr.vmem [resolvable:$true] %s486_s7 }
  0xd4   : > { %s488_s8 = sshll.u32 %s484_s6, 4  ;;  %s463_s15 = scalar_lea.sflag [#allocation5], %s866_s29  ;;  %s489_s8 = int_to_ptr.hbm [resolvable:$true] %s488_s8 }
  0xd5   : > { %s694_s23 = sshra.s32 %s489_s8, 4  ;;  %s700_s12 = scalar_lea.hbm %s1051_s2, 2  ;;  %s695_s23 = int_to_ptr.hbm [resolvable:$true] %s694_s23 }
  0xd6   : > { %s696_s24 = scalar_lea.hbm %s695_s23, 1  ;;  %p701_p10 = scmp.lt.s32.totalorder %s695_s23, %s1051_s2 }
  0xd7   : > { %p697_p6 = scmp.ne.s32.totalorder %s695_s23, %s696_s24  ;;  %p702_p11 = scmp.lt.s32.totalorder %s700_s12, %s696_s24 }
  0xd9   : > { %p698_p7 = pnand %p697_p6, %p822_p4  ;;  %p703_p12 = por %p702_p11, %p701_p10 }
  0xdb   : > { %p699_p9 = pneg %p698_p7 }
  0xdd   : > { %p704_p13 = pnand %p703_p12, %p699_p9 }
 0x10e   : > { %v453_v12 = vpop.permute.xlu2 %452 }
 0x10f   : > { %v455_v13 = vadd.f32 %v453_v12, %v420_v19 }
 0x111   : > { %457 = vst.msk [vmem:[%s873_s30] sm:$0x1] %vm178_vm0, %v455_v13 }
 0x112   : > { %707 = shalt.err (!%p704_p13)
}
 0x113   : > { %590 = dma.vmem_to_hbm [thread:$0]  (%p822_p4), %s487_s7, 16, %s489_s8, %s463_s15  }
 0x114 PF: > { %p600_p0 = scmp.ge.s32.totalorder %s762_s14, 2  ;;  %s500_s29 = sand.u32 1, %s742_s9  }
 0x115   : > { %s501_s30 = scalar_lea.sflag [#allocation3], %s500_s29 }
 0x116   : > { %p594_p1 = pnand %p600_p0, %p829_p8 }
 0x118   : > { %p595_p2 = pneg %p594_p1 }
 0x11a   : > { %733 = dma.done.wait (%p595_p2), %s501_s30, 16  }
 0x11b   : > { %735 = vsyncadd (%p595_p2), %s501_s30, 4294967280  ;;  %s510_s26 = scalar_lea.sflag [#allocation5], %s500_s29 }
 0x11c   : > { %737 = dma.done.wait (%p595_p2), %s510_s26, 16  }
 0x11d   : > { %739 = vsyncadd (%p595_p2), %s510_s26, 4294967280  ;;  %s19_s14 = sadd.s32 1, %s762_s14   ;;  %s1054_s9 = smov %s746_s10 }
 0x11e   : > { %p16_p3 = scmp.ge.s32.totalorder %s19_s14, 4   ;;  %s1055_s10 = smov %s750_s11 }
 0x11f   : > { %s1056_s11 = smov %s835_s22  ;;  %s1057_s12 = smov %s758_s13 }
 0x120   : > { %s1058_s13 = smov %s1060_s17  ;;  %18 = sbr.rel (!%p16_p3) target bundleno = 6 (0x6), region = 80 }
 0x125   :  { %515 = vsyncpa [#allocation3], 1 }
 0x126   :  { %517 = vsyncpa [#allocation3 + $0x1], 1 }
 0x127   :  { %518 = vsyncpa [#allocation5], 1 }
 0x128   :  { %520 = vsyncpa [#allocation5 + $0x1], 1 }

</bundles_post_ra>
